<compile_context>
chip_gen: v7x
topology: tpu7x:2x2x1
jax: 0.10.0
libtpu: 0.0.40
codegen_flags: <defaults>
</compile_context>

<pallas_src>
import functools

import jax
import jax.numpy as jnp
from jax.experimental import pallas as pl
from jax.experimental.pallas import tpu as pltpu

D_IN = 768
D_HID = 100        # logical hidden width from the PyTorch module
D_HID_PAD = 128    # lane-aligned hidden width used inside the kernel
D_OUT = 768


def _fccoder_kernel(x_ref,
                    w1_ref, b1_ref,
                    w2_ref, b2_ref,
                    w3_ref, b3_ref,
                    w4_ref, b4_ref,
                    o_ref):
    """Fused 4-layer MLP: (768->128p) ReLU (128p->128p) ReLU (128p->128p) ReLU (128p->768)."""
    x = x_ref[...]
    h = jnp.dot(x, w1_ref[...], preferred_element_type=jnp.float32) + b1_ref[...]
    h = jnp.maximum(h, 0.0)
    h = jnp.dot(h.astype(w2_ref.dtype), w2_ref[...],
                preferred_element_type=jnp.float32) + b2_ref[...]
    h = jnp.maximum(h, 0.0)
    h = jnp.dot(h.astype(w3_ref.dtype), w3_ref[...],
                preferred_element_type=jnp.float32) + b3_ref[...]
    h = jnp.maximum(h, 0.0)
    out = jnp.dot(h.astype(w4_ref.dtype), w4_ref[...],
                  preferred_element_type=jnp.float32) + b4_ref[...]
    o_ref[...] = out.astype(o_ref.dtype)


def _pad_params(params, mm_dtype):
    """Zero-pad hidden dim 100 -> 128 (exact) and optionally cast weights to mm_dtype."""
    pad_h = D_HID_PAD - D_HID
    padded = dict(
        w1=jnp.pad(params["w1"], ((0, 0), (0, pad_h))),
        b1=jnp.pad(params["b1"], ((0, 0), (0, pad_h))),
        w2=jnp.pad(params["w2"], ((0, pad_h), (0, pad_h))),
        b2=jnp.pad(params["b2"], ((0, 0), (0, pad_h))),
        w3=jnp.pad(params["w3"], ((0, pad_h), (0, pad_h))),
        b3=jnp.pad(params["b3"], ((0, 0), (0, pad_h))),
        w4=jnp.pad(params["w4"], ((0, pad_h), (0, 0))),
        b4=params["b4"],
    )
    # Biases stay f32 (added to the f32 accumulator); only matmul operands cast.
    for k in ("w1", "w2", "w3", "w4"):
        padded[k] = padded[k].astype(mm_dtype)
    return padded


@functools.partial(jax.jit, static_argnames=("tm", "use_bf16"))
def clebert2_forward(corrupted_responses, indexes, params, *, tm=512, use_bf16=False):
    """JAX/Pallas equivalent of CleBert2.forward.

    corrupted_responses: [..., 768] float array.
    indexes: unused (signature parity with the PyTorch module).
    params: dict with pre-transposed weights w1..w4 ([in, out]) and biases b1..b4 ([1, out]).
    Returns: {'restored_resp': [..., 768]}.
    """
    del indexes  # unused by the reference forward pass
    orig_shape = corrupted_responses.shape
    out_dtype = corrupted_responses.dtype
    x2d = corrupted_responses.reshape(-1, D_IN)
    M = x2d.shape[0]

    # Effective row tile: multiple of 8, shrunk so tiny inputs run as one step.
    tm = max(8, (tm // 8) * 8)
    m_align = ((M + 7) // 8) * 8
    tm_eff = min(tm, m_align)

    pad_rows = (-M) % tm_eff
    if pad_rows:
        x2d = jnp.pad(x2d, ((0, pad_rows), (0, 0)))
    Mp = x2d.shape[0]
    grid = (Mp // tm_eff,)

    mm_dtype = jnp.bfloat16 if use_bf16 else x2d.dtype
    if use_bf16:
        x2d = x2d.astype(jnp.bfloat16)
    p = _pad_params(params, mm_dtype)

    def row_map(i):
        return (i, 0)

    def fixed_map(i):
        return (0, 0)

    out2d = pl.pallas_call(
        _fccoder_kernel,
        out_shape=jax.ShapeDtypeStruct((Mp, D_OUT), out_dtype),
        grid_spec=pltpu.PrefetchScalarGridSpec(
            num_scalar_prefetch=0,
            grid=grid,
            in_specs=[
                pl.BlockSpec((tm_eff, D_IN), row_map),            # x tile
                pl.BlockSpec((D_IN, D_HID_PAD), fixed_map),       # w1
                pl.BlockSpec((1, D_HID_PAD), fixed_map),          # b1
                pl.BlockSpec((D_HID_PAD, D_HID_PAD), fixed_map),  # w2
                pl.BlockSpec((1, D_HID_PAD), fixed_map),          # b2
                pl.BlockSpec((D_HID_PAD, D_HID_PAD), fixed_map),  # w3
                pl.BlockSpec((1, D_HID_PAD), fixed_map),          # b3
                pl.BlockSpec((D_HID_PAD, D_OUT), fixed_map),      # w4
                pl.BlockSpec((1, D_OUT), fixed_map),              # b4
            ],
            out_specs=pl.BlockSpec((tm_eff, D_OUT), row_map),
        ),
        compiler_params=pltpu.CompilerParams(
            dimension_semantics=("parallel",),
            # Headroom for larger tm on v5e's 16 MiB scoped default; actual
            # usage at tm=512 is ~8 MiB, well under v7x's 64 MiB physical VMEM.
            vmem_limit_bytes=48 * 1024 * 1024,
        ),
    )(x2d,
      p["w1"], p["b1"],
      p["w2"], p["b2"],
      p["w3"], p["b3"],
      p["w4"], p["b4"])

    out2d = out2d[:M]
    restored = out2d.reshape(orig_shape[:-1] + (D_OUT,))
    return {"restored_resp": restored}


def init_params(key):
    """Deterministic init matching nn.Linear shapes (weights stored [in, out])."""
    dims = [(D_IN, D_HID), (D_HID, D_HID), (D_HID, D_HID), (D_HID, D_OUT)]
    params = {}
    keys = jax.random.split(key, 2 * len(dims))
    for i, (fan_in, fan_out) in enumerate(dims):
        bound = 1.0 / jnp.sqrt(fan_in)
        w = jax.random.uniform(keys[2 * i], (fan_in, fan_out),
                               minval=-bound, maxval=bound, dtype=jnp.float32)
        b = jax.random.uniform(keys[2 * i + 1], (1, fan_out),
                               minval=-bound, maxval=bound, dtype=jnp.float32)
        params[f"w{i + 1}"] = w
        params[f"b{i + 1}"] = b
    return params


def _reference(x, params):
    h = jnp.maximum(x @ params["w1"] + params["b1"][0], 0.0)
    h = jnp.maximum(h @ params["w2"] + params["b2"][0], 0.0)
    h = jnp.maximum(h @ params["w3"] + params["b3"][0], 0.0)
    return h @ params["w4"] + params["b4"][0]


if __name__ == "__main__":
    key = jax.random.PRNGKey(0)
    k_param, k_x, k_x2 = jax.random.split(key, 3)

    params = init_params(k_param)

    # Small case from the module spec: single-step grid path.
    batch, seq = 2, 8
    corrupted_responses = jax.random.normal(k_x, (batch, seq, D_IN), dtype=jnp.float32)
    indexes = jnp.arange(batch * seq, dtype=jnp.int32).reshape(batch, seq)  # unused, parity only

    out = clebert2_forward(corrupted_responses, indexes, params)
    restored = jax.block_until_ready(out["restored_resp"])
    assert restored.shape == (batch, seq, D_OUT), restored.shape
    ref = _reference(corrupted_responses.reshape(-1, D_IN), params).reshape(batch, seq, D_OUT)
    assert jnp.allclose(restored, ref, atol=1e-4, rtol=1e-4), "mismatch vs reference (small)"

    # Larger case: exercises row padding and a multi-step grid with tm=512.
    batch2, seq2 = 4, 300  # M = 1200 -> padded to 1536, grid = (3,)
    x_big = jax.random.normal(k_x2, (batch2, seq2, D_IN), dtype=jnp.float32)
    idx_big = jnp.zeros((batch2, seq2), dtype=jnp.int32)
    out_big = clebert2_forward(x_big, idx_big, params)
    restored_big = jax.block_until_ready(out_big["restored_resp"])
    ref_big = _reference(x_big.reshape(-1, D_IN), params).reshape(batch2, seq2, D_OUT)
    assert jnp.allclose(restored_big, ref_big, atol=1e-4, rtol=1e-4), "mismatch vs reference (big)"

    print("KERNEL_OK")
</pallas_src>

<mosaic_0001>
module attributes {stable_mosaic.version = 11 : i64} {
  func.func @_fccoder_kernel(%arg0: i32, %arg1: memref<16x768xf32, #tpu.memory_space<vmem>>, %arg2: memref<768x128xf32, #tpu.memory_space<vmem>>, %arg3: memref<1x128xf32, #tpu.memory_space<vmem>>, %arg4: memref<128x128xf32, #tpu.memory_space<vmem>>, %arg5: memref<1x128xf32, #tpu.memory_space<vmem>>, %arg6: memref<128x128xf32, #tpu.memory_space<vmem>>, %arg7: memref<1x128xf32, #tpu.memory_space<vmem>>, %arg8: memref<128x768xf32, #tpu.memory_space<vmem>>, %arg9: memref<1x768xf32, #tpu.memory_space<vmem>>, %arg10: memref<16x768xf32, #tpu.memory_space<vmem>>) attributes {dimension_semantics = [#tpu.dimension_semantics<parallel>], iteration_bounds = array<i64: 1>, scalar_prefetch = 0 : i64, scratch_operands = 0 : i64, tpu.core_type = #tpu.core_type<tc>, window_params = [{transform_indices = @transform_0, window_bounds = array<i64: 16, 768>}, {pipeline_mode = #tpu.pipeline_mode<synchronous>, transform_indices = @transform_1, window_bounds = array<i64: 768, 128>}, {pipeline_mode = #tpu.pipeline_mode<synchronous>, transform_indices = @transform_2, window_bounds = array<i64: 1, 128>}, {pipeline_mode = #tpu.pipeline_mode<synchronous>, transform_indices = @transform_3, window_bounds = array<i64: 128, 128>}, {pipeline_mode = #tpu.pipeline_mode<synchronous>, transform_indices = @transform_4, window_bounds = array<i64: 1, 128>}, {pipeline_mode = #tpu.pipeline_mode<synchronous>, transform_indices = @transform_5, window_bounds = array<i64: 128, 128>}, {pipeline_mode = #tpu.pipeline_mode<synchronous>, transform_indices = @transform_6, window_bounds = array<i64: 1, 128>}, {pipeline_mode = #tpu.pipeline_mode<synchronous>, transform_indices = @transform_7, window_bounds = array<i64: 128, 768>}, {pipeline_mode = #tpu.pipeline_mode<synchronous>, transform_indices = @transform_8, window_bounds = array<i64: 1, 768>}, {transform_indices = @transform_9, window_bounds = array<i64: 16, 768>}]} {
    %c0 = arith.constant 0 : index
    %c0_0 = arith.constant 0 : index
    %0 = vector.load %arg1[%c0, %c0_0] : memref<16x768xf32, #tpu.memory_space<vmem>>, vector<16x768xf32>
    %c0_1 = arith.constant 0 : index
    %c0_2 = arith.constant 0 : index
    %1 = vector.load %arg2[%c0_1, %c0_2] : memref<768x128xf32, #tpu.memory_space<vmem>>, vector<768x128xf32>
    %cst = arith.constant dense<0.000000e+00> : vector<16x128xf32>
    %2 = tpu.matmul %0, %1, %cst {dimension_numbers = #tpu.dot_dimension_numbers<[1], [0], [0], [1], [0, 0, 1, 1], [], []>} : vector<16x768xf32>, vector<768x128xf32>, vector<16x128xf32> -> vector<16x128xf32>
    %c0_3 = arith.constant 0 : index
    %c0_4 = arith.constant 0 : index
    %3 = vector.load %arg3[%c0_3, %c0_4] : memref<1x128xf32, #tpu.memory_space<vmem>>, vector<1x128xf32>
    %4 = vector.broadcast %3 : vector<1x128xf32> to vector<16x128xf32>
    %5 = arith.addf %2, %4 : vector<16x128xf32>
    %cst_5 = arith.constant 0.000000e+00 : f32
    %6 = vector.broadcast %cst_5 : f32 to vector<16x128xf32>
    %7 = arith.maximumf %5, %6 : vector<16x128xf32>
    %c0_6 = arith.constant 0 : index
    %c0_7 = arith.constant 0 : index
    %8 = vector.load %arg4[%c0_6, %c0_7] : memref<128x128xf32, #tpu.memory_space<vmem>>, vector<128x128xf32>
    %cst_8 = arith.constant dense<0.000000e+00> : vector<16x128xf32>
    %9 = tpu.matmul %7, %8, %cst_8 {dimension_numbers = #tpu.dot_dimension_numbers<[1], [0], [0], [1], [0, 0, 1, 1], [], []>} : vector<16x128xf32>, vector<128x128xf32>, vector<16x128xf32> -> vector<16x128xf32>
    %c0_9 = arith.constant 0 : index
    %c0_10 = arith.constant 0 : index
    %10 = vector.load %arg5[%c0_9, %c0_10] : memref<1x128xf32, #tpu.memory_space<vmem>>, vector<1x128xf32>
    %11 = vector.broadcast %10 : vector<1x128xf32> to vector<16x128xf32>
    %12 = arith.addf %9, %11 : vector<16x128xf32>
    %cst_11 = arith.constant 0.000000e+00 : f32
    %13 = vector.broadcast %cst_11 : f32 to vector<16x128xf32>
    %14 = arith.maximumf %12, %13 : vector<16x128xf32>
    %c0_12 = arith.constant 0 : index
    %c0_13 = arith.constant 0 : index
    %15 = vector.load %arg6[%c0_12, %c0_13] : memref<128x128xf32, #tpu.memory_space<vmem>>, vector<128x128xf32>
    %cst_14 = arith.constant dense<0.000000e+00> : vector<16x128xf32>
    %16 = tpu.matmul %14, %15, %cst_14 {dimension_numbers = #tpu.dot_dimension_numbers<[1], [0], [0], [1], [0, 0, 1, 1], [], []>} : vector<16x128xf32>, vector<128x128xf32>, vector<16x128xf32> -> vector<16x128xf32>
    %c0_15 = arith.constant 0 : index
    %c0_16 = arith.constant 0 : index
    %17 = vector.load %arg7[%c0_15, %c0_16] : memref<1x128xf32, #tpu.memory_space<vmem>>, vector<1x128xf32>
    %18 = vector.broadcast %17 : vector<1x128xf32> to vector<16x128xf32>
    %19 = arith.addf %16, %18 : vector<16x128xf32>
    %cst_17 = arith.constant 0.000000e+00 : f32
    %20 = vector.broadcast %cst_17 : f32 to vector<16x128xf32>
    %21 = arith.maximumf %19, %20 : vector<16x128xf32>
    %c0_18 = arith.constant 0 : index
    %c0_19 = arith.constant 0 : index
    %22 = vector.load %arg8[%c0_18, %c0_19] : memref<128x768xf32, #tpu.memory_space<vmem>>, vector<128x768xf32>
    %cst_20 = arith.constant dense<0.000000e+00> : vector<16x768xf32>
    %23 = tpu.matmul %21, %22, %cst_20 {dimension_numbers = #tpu.dot_dimension_numbers<[1], [0], [0], [1], [0, 0, 1, 1], [], []>} : vector<16x128xf32>, vector<128x768xf32>, vector<16x768xf32> -> vector<16x768xf32>
    %c0_21 = arith.constant 0 : index
    %c0_22 = arith.constant 0 : index
    %24 = vector.load %arg9[%c0_21, %c0_22] : memref<1x768xf32, #tpu.memory_space<vmem>>, vector<1x768xf32>
    %25 = vector.broadcast %24 : vector<1x768xf32> to vector<16x768xf32>
    %26 = arith.addf %23, %25 : vector<16x768xf32>
    %c0_23 = arith.constant 0 : index
    %c0_24 = arith.constant 0 : index
    %27 = vector.load %arg10[%c0_23, %c0_24] : memref<16x768xf32, #tpu.memory_space<vmem>>, vector<16x768xf32>
    tpu.vector_store %arg10[%c0_23, %c0_24], %26 {strides = array<i32>} : memref<16x768xf32, #tpu.memory_space<vmem>>, vector<16x768xf32>,
    return
  }
  func.func @transform_0(%arg0: i32) -> (i32, i32) {
    %c0_i32 = arith.constant 0 : i32
    %c0_i32_0 = arith.constant 0 : i32
    return %arg0, %c0_i32 : i32, i32
  }
  func.func @transform_1(%arg0: i32) -> (i32, i32) {
    %c0_i32 = arith.constant 0 : i32
    %c0_i32_0 = arith.constant 0 : i32
    %c0_i32_1 = arith.constant 0 : i32
    return %c0_i32, %c0_i32_0 : i32, i32
  }
  func.func @transform_2(%arg0: i32) -> (i32, i32) {
    %c0_i32 = arith.constant 0 : i32
    %c0_i32_0 = arith.constant 0 : i32
    %c0_i32_1 = arith.constant 0 : i32
    return %c0_i32, %c0_i32_0 : i32, i32
  }
  func.func @transform_3(%arg0: i32) -> (i32, i32) {
    %c0_i32 = arith.constant 0 : i32
    %c0_i32_0 = arith.constant 0 : i32
    %c0_i32_1 = arith.constant 0 : i32
    return %c0_i32, %c0_i32_0 : i32, i32
  }
  func.func @transform_4(%arg0: i32) -> (i32, i32) {
    %c0_i32 = arith.constant 0 : i32
    %c0_i32_0 = arith.constant 0 : i32
    %c0_i32_1 = arith.constant 0 : i32
    return %c0_i32, %c0_i32_0 : i32, i32
  }
  func.func @transform_5(%arg0: i32) -> (i32, i32) {
    %c0_i32 = arith.constant 0 : i32
    %c0_i32_0 = arith.constant 0 : i32
    %c0_i32_1 = arith.constant 0 : i32
    return %c0_i32, %c0_i32_0 : i32, i32
  }
  func.func @transform_6(%arg0: i32) -> (i32, i32) {
    %c0_i32 = arith.constant 0 : i32
    %c0_i32_0 = arith.constant 0 : i32
    %c0_i32_1 = arith.constant 0 : i32
    return %c0_i32, %c0_i32_0 : i32, i32
  }
  func.func @transform_7(%arg0: i32) -> (i32, i32) {
    %c0_i32 = arith.constant 0 : i32
    %c0_i32_0 = arith.constant 0 : i32
    %c0_i32_1 = arith.constant 0 : i32
    return %c0_i32, %c0_i32_0 : i32, i32
  }
  func.func @transform_8(%arg0: i32) -> (i32, i32) {
    %c0_i32 = arith.constant 0 : i32
    %c0_i32_0 = arith.constant 0 : i32
    %c0_i32_1 = arith.constant 0 : i32
    return %c0_i32, %c0_i32_0 : i32, i32
  }
  func.func @transform_9(%arg0: i32) -> (i32, i32) {
    %c0_i32 = arith.constant 0 : i32
    %c0_i32_0 = arith.constant 0 : i32
    return %arg0, %c0_i32 : i32, i32
  }
}

</mosaic_0001>

<bundles_post_ra>
// kernel: clebert2_forward.1
= control target key start
LH: loop header
LB: loop body
LE: loop exit
PB: predicated region body
PF: predicated region fallthrough
CT: control target
= control target key end

     0   :  { %s2266_s0 = inlined_call_operand.vmem [shape: f32[16,768], index: 0, kind: input, shape index: {}]   ;;  %s2267_s1 = inlined_call_operand.vmem [shape: f32[768,128], index: 1, kind: input, shape index: {}]   ;;  %s2268_s2 = inlined_call_operand.vmem [shape: f32[1,128], index: 2, kind: input, shape index: {}]   ;;  %s2269_s3 = inlined_call_operand.vmem [shape: f32[128,128], index: 3, kind: input, shape index: {}]   ;;  %s2270_s4 = inlined_call_operand.vmem [shape: f32[1,128], index: 4, kind: input, shape index: {}]   ;;  %s2271_s5 = inlined_call_operand.vmem [shape: f32[128,128], index: 5, kind: input, shape index: {}]   ;;  %s2272_s6 = inlined_call_operand.vmem [shape: f32[1,128], index: 6, kind: input, shape index: {}]   ;;  %s2273_s7 = inlined_call_operand.vmem [shape: f32[128,768], index: 7, kind: input, shape index: {}]   ;;  %s2274_s8 = inlined_call_operand.vmem [shape: f32[1,768], index: 8, kind: input, shape index: {}]   ;;  %s2275_s9 = inlined_call_operand.hbm [shape: f32[16,768], index: 9, kind: output, shape index: {}]  }
   0x1   :  { %v61_v0 = vld [vmem:[%s2267_s1 + $0x80] sm:$0xff]  ;;  %v62_v1 = vld [vmem:[%s2267_s1 + $0x88] sm:$0xff]  ;;  %v63_v11 = vld [vmem:[%s2267_s1 + $0x90] sm:$0xff] }
   0x2   :  { %v45_v2 = vld [vmem:[%s2267_s1] sm:$0xff]  ;;  %v1185_v3 = vpack.c.bf16 %v62_v1, %v61_v0  ;;  %v46_v4 = vld [vmem:[%s2267_s1 + $0x8] sm:$0xff]  ;;  %v64_v13 = vld [vmem:[%s2267_s1 + $0x98] sm:$0xff] }
   0x3   :  { %v93_v5 = vld [vmem:[%s2267_s1 + $0x180] sm:$0xff]  ;;  %v94_v6 = vld [vmem:[%s2267_s1 + $0x188] sm:$0xff]  ;;  %v1187_v7 = vpack.c.bf16 %v46_v4, %v45_v2  ;;  %v47_v14 = vld [vmem:[%s2267_s1 + $0x10] sm:$0xff]  ;;  %v1189_v16 = vpack.c.bf16 %v64_v13, %v63_v11 }
   0x4   :  { %v1217_v8 = vpack.c.bf16 %v94_v6, %v93_v5  ;;  %v77_v9 = vld [vmem:[%s2267_s1 + $0x100] sm:$0xff]  ;;  %v78_v10 = vld [vmem:[%s2267_s1 + $0x108] sm:$0xff]  ;;  %1186 = vmatprep.subr.bf16.mxu0 %v1185_v3  ;;  %v48_v15 = vld [vmem:[%s2267_s1 + $0x18] sm:$0xff] }
   0x5   :  { %v1219_v12 = vpack.c.bf16 %v78_v10, %v77_v9  ;;  %1188 = vmatpush3.bf16.msra.mxu0 %v1187_v7  ;;  %v1191_v17 = vpack.c.bf16 %v48_v15, %v47_v14  ;;  %v95_v18 = vld [vmem:[%s2267_s1 + $0x190] sm:$0xff]  ;;  %v96_v19 = vld [vmem:[%s2267_s1 + $0x198] sm:$0xff]  ;;  %v65_v23 = vld [vmem:[%s2267_s1 + $0xa0] sm:$0xff] }
   0x6   :  { %1218 = vmatprep.subr.bf16.mxu1 %v1217_v8  ;;  %v79_v20 = vld [vmem:[%s2267_s1 + $0x110] sm:$0xff]  ;;  %v1221_v21 = vpack.c.bf16 %v96_v19, %v95_v18  ;;  %v80_v22 = vld [vmem:[%s2267_s1 + $0x118] sm:$0xff]  ;;  %v66_v24 = vld [vmem:[%s2267_s1 + $0xa8] sm:$0xff]  ;;  %1190 = vmatprep.subr.bf16.mxu0 %v1189_v16 }
   0x7   :  { %1220 = vmatpush3.bf16.msra.mxu1 %v1219_v12  ;;  %v1223_v25 = vpack.c.bf16 %v80_v22, %v79_v20  ;;  %v1193_v26 = vpack.c.bf16 %v66_v24, %v65_v23  ;;  %v49_v27 = vld [vmem:[%s2267_s1 + $0x20] sm:$0xff]  ;;  %v50_v28 = vld [vmem:[%s2267_s1 + $0x28] sm:$0xff]  ;;  %v67_v35 = vld [vmem:[%s2267_s1 + $0xb0] sm:$0xff] }
   0x8   :  { %v97_v29 = vld [vmem:[%s2267_s1 + $0x1a0] sm:$0xff]  ;;  %1222 = vmatprep.subr.bf16.mxu1 %v1221_v21  ;;  %v98_v30 = vld [vmem:[%s2267_s1 + $0x1a8] sm:$0xff]  ;;  %v1195_v33 = vpack.c.bf16 %v50_v28, %v49_v27  ;;  %v68_v36 = vld [vmem:[%s2267_s1 + $0xb8] sm:$0xff] }
   0x9   :  { %v81_v31 = vld [vmem:[%s2267_s1 + $0x120] sm:$0xff]  ;;  %v82_v32 = vld [vmem:[%s2267_s1 + $0x128] sm:$0xff]  ;;  %1192 = vmatpush3.bf16.msra.mxu0 %v1191_v17  ;;  %v1225_v34 = vpack.c.bf16 %v98_v30, %v97_v29  ;;  %v51_v37 = vld [vmem:[%s2267_s1 + $0x30] sm:$0xff]  ;;  %v1197_v39 = vpack.c.bf16 %v68_v36, %v67_v35 }
   0xa   :  { %1194 = vmatprep.subr.bf16.mxu0 %v1193_v26  ;;  %v1227_v38 = vpack.c.bf16 %v82_v32, %v81_v31  ;;  %v52_v40 = vld [vmem:[%s2267_s1 + $0x38] sm:$0xff]  ;;  %v99_v41 = vld [vmem:[%s2267_s1 + $0x1b0] sm:$0xff]  ;;  %v69_v46 = vld [vmem:[%s2267_s1 + $0xc0] sm:$0xff] }
   0xb   :  { %1224 = vmatpush3.bf16.msra.mxu1 %v1223_v25  ;;  %v100_v42 = vld [vmem:[%s2267_s1 + $0x1b8] sm:$0xff]  ;;  %v83_v44 = vld [vmem:[%s2267_s1 + $0x130] sm:$0xff]  ;;  %v70_v47 = vld [vmem:[%s2267_s1 + $0xc8] sm:$0xff]  ;;  %v1199_v48 = vpack.c.bf16 %v52_v40, %v51_v37 }
   0xc   :  { %1226 = vmatprep.subr.bf16.mxu1 %v1225_v34  ;;  %v1229_v43 = vpack.c.bf16 %v100_v42, %v99_v41  ;;  %v84_v45 = vld [vmem:[%s2267_s1 + $0x138] sm:$0xff]  ;;  %v101_v49 = vld [vmem:[%s2267_s1 + $0x1c0] sm:$0xff]  ;;  %v102_v50 = vld [vmem:[%s2267_s1 + $0x1c8] sm:$0xff]  ;;  %v1201_v52 = vpack.c.bf16 %v70_v47, %v69_v46 }
   0xd   :  { %1196 = vmatpush3.bf16.msra.mxu0 %v1195_v33  ;;  %v1231_v51 = vpack.c.bf16 %v84_v45, %v83_v44  ;;  %v53_v53 = vld [vmem:[%s2267_s1 + $0x40] sm:$0xff]  ;;  %v54_v54 = vld [vmem:[%s2267_s1 + $0x48] sm:$0xff]  ;;  %v1233_v56 = vpack.c.bf16 %v102_v50, %v101_v49  ;;  %v71_v58 = vld [vmem:[%s2267_s1 + $0xd0] sm:$0xff] }
   0xe   :  { %1198 = vmatprep.subr.bf16.mxu0 %v1197_v39  ;;  %v85_v55 = vld [vmem:[%s2267_s1 + $0x140] sm:$0xff]  ;;  %v86_v57 = vld [vmem:[%s2267_s1 + $0x148] sm:$0xff]  ;;  %v72_v59 = vld [vmem:[%s2267_s1 + $0xd8] sm:$0xff]  ;;  %v1203_v62 = vpack.c.bf16 %v54_v54, %v53_v53 }
   0xf   :  { %1228 = vmatpush3.bf16.msra.mxu1 %v1227_v38  ;;  %v103_v60 = vld [vmem:[%s2267_s1 + $0x1d0] sm:$0xff]  ;;  %v104_v61 = vld [vmem:[%s2267_s1 + $0x1d8] sm:$0xff]  ;;  %v1235_v63 = vpack.c.bf16 %v86_v57, %v85_v55  ;;  %v1205_v0 = vpack.c.bf16 %v72_v59, %v71_v58  ;;  %v73_v6 = vld [vmem:[%s2267_s1 + $0xe0] sm:$0xff] }
  0x10   :  { %1230 = vmatprep.subr.bf16.mxu1 %v1229_v43  ;;  %v55_v1 = vld [vmem:[%s2267_s1 + $0x50] sm:$0xff]  ;;  %v56_v2 = vld [vmem:[%s2267_s1 + $0x58] sm:$0xff]  ;;  %v1237_v4 = vpack.c.bf16 %v104_v61, %v103_v60  ;;  %v74_v7 = vld [vmem:[%s2267_s1 + $0xe8] sm:$0xff] }
  0x11   :  { %1200 = vmatpush3.bf16.msra.mxu0 %v1199_v48  ;;  %v87_v3 = vld [vmem:[%s2267_s1 + $0x150] sm:$0xff]  ;;  %v88_v5 = vld [vmem:[%s2267_s1 + $0x158] sm:$0xff]  ;;  %v105_v8 = vld [vmem:[%s2267_s1 + $0x1e0] sm:$0xff]  ;;  %v1207_v10 = vpack.c.bf16 %v56_v2, %v55_v1  ;;  %v1209_v14 = vpack.c.bf16 %v74_v7, %v73_v6 }
  0x12   :  { %1202 = vmatprep.subr.bf16.mxu0 %v1201_v52  ;;  %v106_v9 = vld [vmem:[%s2267_s1 + $0x1e8] sm:$0xff]  ;;  %v57_v11 = vld [vmem:[%s2267_s1 + $0x60] sm:$0xff]  ;;  %v1239_v13 = vpack.c.bf16 %v88_v5, %v87_v3  ;;  %v75_v19 = vld [vmem:[%s2267_s1 + $0xf0] sm:$0xff] }
  0x13   :  { %1232 = vmatpush3.bf16.msra.mxu1 %v1231_v51  ;;  %v34_v12 = vld [vmem:[%s2266_s0 + $0x8] sm:$0xff]  ;;  %v89_v16 = vld [vmem:[%s2267_s1 + $0x160] sm:$0xff]  ;;  %v1241_v18 = vpack.c.bf16 %v106_v9, %v105_v8  ;;  %v76_v20 = vld [vmem:[%s2267_s1 + $0xf8] sm:$0xff] }
  0x14   :  { %1234 = vmatprep.subr.bf16.mxu1 %v1233_v56  ;;  %v58_v15 = vld [vmem:[%s2267_s1 + $0x68] sm:$0xff]  ;;  %212 = vmatprep.mubr.f32.mxu0 %v34_v12  ;;  %v36_v21 = vld [vmem:[%s2266_s0 + $0x18] sm:$0xff]  ;;  %v107_v22 = vld [vmem:[%s2267_s1 + $0x1f0] sm:$0xff]  ;;  %v1213_v26 = vpack.c.bf16 %v76_v20, %v75_v19 }
  0x15   :  { %1204 = vmatpush3.bf16.msra.mxu0 %v1203_v62  ;;  %v90_v17 = vld [vmem:[%s2267_s1 + $0x168] sm:$0xff]  ;;  %v108_v23 = vld [vmem:[%s2267_s1 + $0x1f8] sm:$0xff]  ;;  %287 = vmatprep.mubr.f32.mxu1 %v36_v21  ;;  %v1211_v24 = vpack.c.bf16 %v58_v15, %v57_v11  ;;  %v59_v27 = vld [vmem:[%s2267_s1 + $0x70] sm:$0xff] }
  0x16   :  { %1206 = vmatprep.subr.bf16.mxu0 %v1205_v0  ;;  %v1243_v25 = vpack.c.bf16 %v90_v17, %v89_v16  ;;  %v60_v28 = vld [vmem:[%s2267_s1 + $0x78] sm:$0xff]  ;;  %v91_v29 = vld [vmem:[%s2267_s1 + $0x170] sm:$0xff]  ;;  %v1245_v30 = vpack.c.bf16 %v108_v23, %v107_v22  ;;  %v125_v32 = vld [vmem:[%s2267_s1 + $0x280] sm:$0xff] }
  0x17   :  { %1236 = vmatpush3.bf16.msra.mxu1 %v1235_v63  ;;  %v92_v31 = vld [vmem:[%s2267_s1 + $0x178] sm:$0xff]  ;;  %v126_v33 = vld [vmem:[%s2267_s1 + $0x288] sm:$0xff]  ;;  %v1215_v34 = vpack.c.bf16 %v60_v28, %v59_v27  ;;  %v109_v37 = vld [vmem:[%s2267_s1 + $0x200] sm:$0xff] }
  0x18   :  { %1238 = vmatprep.subr.bf16.mxu1 %v1237_v4  ;;  %v1247_v35 = vpack.c.bf16 %v92_v31, %v91_v29  ;;  %v1249_v36 = vpack.c.bf16 %v126_v33, %v125_v32  ;;  %v110_v38 = vld [vmem:[%s2267_s1 + $0x208] sm:$0xff]  ;;  %v127_v39 = vld [vmem:[%s2267_s1 + $0x290] sm:$0xff]  ;;  %v128_v40 = vld [vmem:[%s2267_s1 + $0x298] sm:$0xff] }
  0x19   :  { %1208 = vmatpush3.bf16.msra.mxu0 %v1207_v10  ;;  %v33_v41 = vld [vmem:[%s2266_s0] sm:$0xff]  ;;  %v1251_v42 = vpack.c.bf16 %v110_v38, %v109_v37  ;;  %v35_v43 = vld [vmem:[%s2266_s0 + $0x10] sm:$0xff]  ;;  %v1253_v44 = vpack.c.bf16 %v128_v40, %v127_v39  ;;  %v112_v46 = vld [vmem:[%s2267_s1 + $0x218] sm:$0xff] }
  0x1a   :  { %1210 = vmatprep.subr.bf16.mxu0 %v1209_v14  ;;  %v111_v45 = vld [vmem:[%s2267_s1 + $0x210] sm:$0xff]  ;;  %v129_v47 = vld [vmem:[%s2267_s1 + $0x2a0] sm:$0xff]  ;;  %v130_v48 = vld [vmem:[%s2267_s1 + $0x2a8] sm:$0xff] }
  0x1b   :  { %1240 = vmatpush3.bf16.msra.mxu1 %v1239_v13  ;;  %v40_v49 = vld [vmem:[%s2266_s0 + $0x38] sm:$0xff]  ;;  %v42_v50 = vld [vmem:[%s2266_s0 + $0x48] sm:$0xff]  ;;  %v1255_v51 = vpack.c.bf16 %v112_v46, %v111_v45  ;;  %v39_v52 = vld [vmem:[%s2266_s0 + $0x30] sm:$0xff] }
  0x1c   :  { %1242 = vmatprep.subr.bf16.mxu1 %v1241_v18 }
  0x1d   :  { %1212 = vmatpush3.bf16.msra.mxu0 %v1211_v24 }
  0x1e   :  { %1214 = vmatprep.subr.bf16.mxu0 %v1213_v26 }
  0x1f   :  { %1244 = vmatpush3.bf16.msra.mxu1 %v1243_v25 }
  0x20   :  { %1246 = vmatprep.subr.bf16.mxu1 %v1245_v30 }
  0x21   :  { %1216 = vmatpush3.bf16.msra.mxu0 %v1215_v34 }
  0x22   :  { %1250 = vmatprep.subr.bf16.mxu0 %v1249_v36 }
  0x23   :  { %1248 = vmatpush3.bf16.msra.mxu1 %v1247_v35 }
  0x24   :  { %213 = vmatmul.mubr.f32.vlgmr.msra.gmra.mrb[0].mxu0 %v33_v41 }
  0x25   :  { %1252 = vmatpush3.bf16.msra.mxu0 %v1251_v42 }
  0x26   :  { %288 = vmatmul.mubr.f32.vlgmr.msra.gmra.mrb[0].mxu1 %v35_v43 }
  0x27   :  { %14 = vsyncpa [#allocation3], 0  ;;  %1254 = vmatprep.subr.bf16.mxu0 %v1253_v44  ;;  %v1257_v53 = vpack.c.bf16 %v130_v48, %v129_v47  ;;  %v113_v54 = vld [vmem:[%s2267_s1 + $0x220] sm:$0xff]  ;;  %v114_v55 = vld [vmem:[%s2267_s1 + $0x228] sm:$0xff]  ;;  %217 = vmatprep.mubr.f32.mxu0 %v40_v49 }
  0x28   :  { %v41_v56 = vld [vmem:[%s2266_s0 + $0x40] sm:$0xff]  ;;  %v131_v57 = vld [vmem:[%s2267_s1 + $0x2b0] sm:$0xff]  ;;  %v132_v58 = vld [vmem:[%s2267_s1 + $0x2b8] sm:$0xff]  ;;  %292 = vmatprep.mubr.f32.mxu1 %v42_v50  ;;  %218 = vmatmul.mubr.f32.gmra.mrb[2].mxu0 %v39_v52  ;;  %v1259_v60 = vpack.c.bf16 %v114_v55, %v113_v54 }
  0x29   :  { %v38_v59 = vld [vmem:[%s2266_s0 + $0x28] sm:$0xff]  ;;  %1256 = vmatpush3.bf16.msra.mxu0 %v1255_v51  ;;  %v1261_v61 = vpack.c.bf16 %v132_v58, %v131_v57  ;;  %v115_v62 = vld [vmem:[%s2267_s1 + $0x230] sm:$0xff]  ;;  %v116_v63 = vld [vmem:[%s2267_s1 + $0x238] sm:$0xff] }
  0x2a   :  { %293 = vmatmul.mubr.f32.gmra.mrb[2].mxu1 %v41_v56  ;;  %1258 = vmatprep.subr.bf16.mxu0 %v1257_v53  ;;  %v133_v0 = vld [vmem:[%s2267_s1 + $0x2c0] sm:$0xff]  ;;  %v134_v1 = vld [vmem:[%s2267_s1 + $0x2c8] sm:$0xff]  ;;  %v1263_v2 = vpack.c.bf16 %v116_v63, %v115_v62  ;;  %v135_v6 = vld [vmem:[%s2267_s1 + $0x2d0] sm:$0xff] }
  0x2b   :  { %362 = vmatprep.mubr.f32.mxu0 %v38_v59  ;;  %v1265_v3 = vpack.c.bf16 %v134_v1, %v133_v0  ;;  %v117_v4 = vld [vmem:[%s2267_s1 + $0x240] sm:$0xff]  ;;  %v118_v5 = vld [vmem:[%s2267_s1 + $0x248] sm:$0xff]  ;;  %v136_v7 = vld [vmem:[%s2267_s1 + $0x2d8] sm:$0xff] }
  0x2c   :  { %v1267_v8 = vpack.c.bf16 %v118_v5, %v117_v4  ;;  %v1269_v9 = vpack.c.bf16 %v136_v7, %v135_v6  ;;  %v119_v10 = vld [vmem:[%s2267_s1 + $0x250] sm:$0xff]  ;;  %v120_v11 = vld [vmem:[%s2267_s1 + $0x258] sm:$0xff]  ;;  %v137_v12 = vld [vmem:[%s2267_s1 + $0x2e0] sm:$0xff] }
  0x2d   :  { %1260 = vmatpush3.bf16.msra.mxu0 %v1259_v60  ;;  %v138_v13 = vld [vmem:[%s2267_s1 + $0x2e8] sm:$0xff]  ;;  %v1271_v14 = vpack.c.bf16 %v120_v11, %v119_v10  ;;  %v121_v16 = vld [vmem:[%s2267_s1 + $0x260] sm:$0xff]  ;;  %v139_v18 = vld [vmem:[%s2267_s1 + $0x2f0] sm:$0xff] }
  0x2e   :  { %1262 = vmatprep.subr.bf16.mxu0 %v1261_v61  ;;  %v1273_v15 = vpack.c.bf16 %v138_v13, %v137_v12  ;;  %v122_v17 = vld [vmem:[%s2267_s1 + $0x268] sm:$0xff]  ;;  %v140_v19 = vld [vmem:[%s2267_s1 + $0x2f8] sm:$0xff]  ;;  %v123_v22 = vld [vmem:[%s2267_s1 + $0x270] sm:$0xff] }
  0x2f   :  { %v1275_v20 = vpack.c.bf16 %v122_v17, %v121_v16  ;;  %v1277_v21 = vpack.c.bf16 %v140_v19, %v139_v18  ;;  %v124_v23 = vld [vmem:[%s2267_s1 + $0x278] sm:$0xff]  ;;  %v37_v25 = vld [vmem:[%s2266_s0 + $0x20] sm:$0xff]  ;;  %v43_v27 = vld [vmem:[%s2266_s0 + $0x50] sm:$0xff] }
  0x30   :  { %v1279_v24 = vpack.c.bf16 %v124_v23, %v123_v22  ;;  %v44_v26 = vld [vmem:[%s2266_s0 + $0x58] sm:$0xff]  ;;  %v375_v28 = vld [vmem:[%s2269_s3] sm:$0xff]  ;;  %v376_v29 = vld [vmem:[%s2269_s3 + $0x8] sm:$0xff] }
  0x31   :  { %1264 = vmatpush3.bf16.msra.mxu0 %v1263_v2  ;;  %v377_v30 = vld [vmem:[%s2269_s3 + $0x10] sm:$0xff]  ;;  %v1281_v31 = vpack.c.bf16 %v376_v29, %v375_v28  ;;  %v378_v32 = vld [vmem:[%s2269_s3 + $0x18] sm:$0xff]  ;;  %v379_v34 = vld [vmem:[%s2269_s3 + $0x20] sm:$0xff] }
  0x32   :  { %1266 = vmatprep.subr.bf16.mxu0 %v1265_v3  ;;  %v1285_v33 = vpack.c.bf16 %v378_v32, %v377_v30  ;;  %v380_v35 = vld [vmem:[%s2269_s3 + $0x28] sm:$0xff]  ;;  %v381_v37 = vld [vmem:[%s2269_s3 + $0x30] sm:$0xff]  ;;  %v382_v38 = vld [vmem:[%s2269_s3 + $0x38] sm:$0xff] }
  0x33   :  { %1282 = vmatprep.subr.bf16.mxu1 %v1281_v31  ;;  %v1289_v36 = vpack.c.bf16 %v380_v35, %v379_v34  ;;  %v1293_v39 = vpack.c.bf16 %v382_v38, %v381_v37  ;;  %v383_v40 = vld [vmem:[%s2269_s3 + $0x40] sm:$0xff]  ;;  %v384_v41 = vld [vmem:[%s2269_s3 + $0x48] sm:$0xff]  ;;  %v385_v43 = vld [vmem:[%s2269_s3 + $0x50] sm:$0xff] }
  0x34   :  { %1284 = vmatpush3.bf16.msra.mxu1 %v1281_v31  ;;  %v1297_v42 = vpack.c.bf16 %v384_v41, %v383_v40  ;;  %v386_v44 = vld [vmem:[%s2269_s3 + $0x58] sm:$0xff]  ;;  %v387_v46 = vld [vmem:[%s2269_s3 + $0x60] sm:$0xff]  ;;  %v388_v47 = vld [vmem:[%s2269_s3 + $0x68] sm:$0xff] }
  0x35   :  { %1268 = vmatpush3.bf16.msra.mxu0 %v1267_v8  ;;  %1286 = vmatprep.subr.bf16.mxu1 %v1285_v33  ;;  %v1301_v45 = vpack.c.bf16 %v386_v44, %v385_v43  ;;  %v1305_v48 = vpack.c.bf16 %v388_v47, %v387_v46  ;;  %v389_v49 = vld [vmem:[%s2269_s3 + $0x70] sm:$0xff]  ;;  %v390_v50 = vld [vmem:[%s2269_s3 + $0x78] sm:$0xff]  ;;  %v475_v52 = vld [vmem:[%s2271_s5] sm:$0xff] }
  0x36   :  { %1270 = vmatprep.subr.bf16.mxu0 %v1269_v9  ;;  %v1309_v51 = vpack.c.bf16 %v390_v50, %v389_v49  ;;  %v476_v53 = vld [vmem:[%s2271_s5 + $0x8] sm:$0xff]  ;;  %v477_v54 = vld [vmem:[%s2271_s5 + $0x10] sm:$0xff]  ;;  %v478_v56 = vld [vmem:[%s2271_s5 + $0x18] sm:$0xff] }
  0x37   :  { %v1313_v55 = vpack.c.bf16 %v476_v53, %v475_v52  ;;  %v1317_v57 = vpack.c.bf16 %v478_v56, %v477_v54  ;;  %v479_v58 = vld [vmem:[%s2271_s5 + $0x20] sm:$0xff]  ;;  %v480_v59 = vld [vmem:[%s2271_s5 + $0x28] sm:$0xff]  ;;  %v481_v61 = vld [vmem:[%s2271_s5 + $0x30] sm:$0xff] }
  0x38   :  { %1288 = vmatpush3.bf16.msra.mxu1 %v1285_v33  ;;  %v1321_v60 = vpack.c.bf16 %v480_v59, %v479_v58  ;;  %v482_v62 = vld [vmem:[%s2271_s5 + $0x38] sm:$0xff]  ;;  %v483_v0 = vld [vmem:[%s2271_s5 + $0x40] sm:$0xff]  ;;  %v484_v1 = vld [vmem:[%s2271_s5 + $0x48] sm:$0xff] }
  0x39   :  { %1272 = vmatpush3.bf16.msra.mxu0 %v1271_v14  ;;  %1290 = vmatprep.subr.bf16.mxu1 %v1289_v36  ;;  %v1325_v63 = vpack.c.bf16 %v482_v62, %v481_v61  ;;  %v1329_v2 = vpack.c.bf16 %v484_v1, %v483_v0  ;;  %v485_v3 = vld [vmem:[%s2271_s5 + $0x50] sm:$0xff]  ;;  %v486_v4 = vld [vmem:[%s2271_s5 + $0x58] sm:$0xff]  ;;  %v487_v6 = vld [vmem:[%s2271_s5 + $0x60] sm:$0xff] }
  0x3a   :  { %1274 = vmatprep.subr.bf16.mxu0 %v1273_v15  ;;  %v1333_v5 = vpack.c.bf16 %v486_v4, %v485_v3  ;;  %v488_v7 = vld [vmem:[%s2271_s5 + $0x68] sm:$0xff]  ;;  %v962_v10 = vld [vmem:[%s2268_s2] ss:$0 sm:$0xff]  ;;  %v490_v37 = vld [vmem:[%s2271_s5 + $0x78] sm:$0xff] }
  0x3b   :  { %v1337_v8 = vpack.c.bf16 %v488_v7, %v487_v6  ;;  %v582_v40 = vld [vmem:[%s2273_s7 + $0x38] sm:$0xff]  ;;  %v575_v41 = vld [vmem:[%s2273_s7] sm:$0xff]  ;;  %v581_v43 = vld [vmem:[%s2273_s7 + $0x30] sm:$0xff] }
  0x3c   :  { %1292 = vmatpush3.bf16.msra.mxu1 %v1289_v36  ;;  %v489_v36 = vld [vmem:[%s2271_s5 + $0x70] sm:$0xff]  ;;  %v578_v44 = vld [vmem:[%s2273_s7 + $0x18] sm:$0xff]  ;;  %v1347_v46 = vpack.c.bf16 %v581_v43, %v575_v41  ;;  %v587_v50 = vld [vmem:[%s2273_s7 + $0x60] sm:$0xff] }
  0x3d   :  { %1276 = vmatpush3.bf16.msra.mxu0 %v1275_v20  ;;  %1294 = vmatprep.subr.bf16.mxu1 %v1293_v39  ;;  %v1341_v38 = vpack.c.bf16 %v490_v37, %v489_v36  ;;  %v594_v49 = vld [vmem:[%s2273_s7 + $0x98] sm:$0xff]  ;;  %v600_v54 = vld [vmem:[%s2273_s7 + $0xc8] sm:$0xff]  ;;  %v605_v58 = vld [vmem:[%s2273_s7 + $0xf0] sm:$0xff] }
  0x3e   :  { %1278 = vmatprep.subr.bf16.mxu0 %v1277_v21  ;;  %v618_v61 = vld [vmem:[%s2273_s7 + $0x158] sm:$0xff]  ;;  %v611_v62 = vld [vmem:[%s2273_s7 + $0x120] sm:$0xff]  ;;  %v617_v0 = vld [vmem:[%s2273_s7 + $0x150] sm:$0xff] }
  0x3f   :  { %v1359_v1 = vpack.c.bf16 %v617_v0, %v611_v62  ;;  %v630_v3 = vld [vmem:[%s2273_s7 + $0x1b8] sm:$0xff]  ;;  %v623_v4 = vld [vmem:[%s2273_s7 + $0x180] sm:$0xff]  ;;  %v629_v6 = vld [vmem:[%s2273_s7 + $0x1b0] sm:$0xff] }
  0x40   :  { %1296 = vmatpush3.bf16.msra.mxu1 %v1293_v39  ;;  %v576_v39 = vld [vmem:[%s2273_s7 + $0x8] sm:$0xff]  ;;  %v1363_v7 = vpack.c.bf16 %v629_v6, %v623_v4  ;;  %v614_v41 = vld [vmem:[%s2273_s7 + $0x138] sm:$0xff]  ;;  %v655_v0 = vld [vmem:[%s2273_s7 + $0x280] sm:$0xff] }
  0x41   :  { %1280 = vmatpush3.bf16.msra.mxu0 %v1279_v24  ;;  %1298 = vmatprep.subr.bf16.mxu1 %v1297_v42  ;;  %v608_v36 = vld [vmem:[%s2273_s7 + $0x108] sm:$0xff]  ;;  %v665_v6 = vld [vmem:[%s2273_s7 + $0x2d0] sm:$0xff] }
  0x42   :  { %1314 = vmatprep.subr.bf16.mxu0 %v1313_v55 }
  0x44   :  { %363 = vmatmul.mubr.f32.vlgmr.msra.gmra.mrb[4].mxu0 %v37_v25  ;;  %1300 = vmatpush3.bf16.msra.mxu1 %v1297_v42  ;;  %v1345_v42 = vpack.c.bf16 %v582_v40, %v576_v39  ;;  %v601_v39 = vld [vmem:[%s2273_s7 + $0xd0] sm:$0xff]  ;;  %v607_v40 = vld [vmem:[%s2273_s7 + $0x100] sm:$0xff] }
  0x45   :  { %367 = vmatprep.mubr.f32.mxu0 %v44_v26  ;;  %1302 = vmatprep.subr.bf16.mxu1 %v1301_v45  ;;  %v1387_v43 = vpack.c.bf16 %v607_v40, %v601_v39  ;;  %v616_v39 = vld [vmem:[%s2273_s7 + $0x148] sm:$0xff]  ;;  %v622_v40 = vld [vmem:[%s2273_s7 + $0x178] sm:$0xff] }
  0x46   :  { %1316 = vmatpush3.bf16.msra.mxu0 %v1313_v55  ;;  %v606_v55 = vld [vmem:[%s2273_s7 + $0xf8] sm:$0xff] }
  0x47   :  { %1318 = vmatprep.subr.bf16.mxu0 %v1317_v57  ;;  %v1353_v56 = vpack.c.bf16 %v606_v55, %v600_v54  ;;  %v644_v54 = vld [vmem:[%s2273_s7 + $0x228] sm:$0xff] }
  0x48   :  { %368 = vmatmul.mubr.f32.gmra.mrb[6].mxu0 %v43_v27  ;;  %1304 = vmatpush3.bf16.msra.mxu1 %v1301_v45  ;;  %v584_v45 = vld [vmem:[%s2273_s7 + $0x48] sm:$0xff] }
  0x49   :  { %1306 = vmatprep.subr.bf16.mxu1 %v1305_v48  ;;  %v1377_v47 = vpack.c.bf16 %v584_v45, %v578_v44  ;;  %v613_v45 = vld [vmem:[%s2273_s7 + $0x130] sm:$0xff] }
  0x4a   :  { %1320 = vmatpush3.bf16.msra.mxu0 %v1317_v57  ;;  %v599_v57 = vld [vmem:[%s2273_s7 + $0xc0] sm:$0xff] }
  0x4b   :  { %1322 = vmatprep.subr.bf16.mxu0 %v1321_v60  ;;  %v1355_v59 = vpack.c.bf16 %v605_v58, %v599_v57  ;;  %v637_v57 = vld [vmem:[%s2273_s7 + $0x1f0] sm:$0xff]  ;;  %v643_v58 = vld [vmem:[%s2273_s7 + $0x220] sm:$0xff] }
  0x4c   :  { %1308 = vmatpush3.bf16.msra.mxu1 %v1305_v48  ;;  %v588_v48 = vld [vmem:[%s2273_s7 + $0x68] sm:$0xff] }
  0x4d   :  { %1310 = vmatprep.subr.bf16.mxu1 %v1309_v51  ;;  %v1349_v52 = vpack.c.bf16 %v594_v49, %v588_v48  ;;  %v632_v48 = vld [vmem:[%s2273_s7 + $0x1c8] sm:$0xff] }
  0x4e   :  { %1324 = vmatpush3.bf16.msra.mxu0 %v1321_v60  ;;  %v612_v60 = vld [vmem:[%s2273_s7 + $0x128] sm:$0xff] }
  0x4f   :  { %1326 = vmatprep.subr.bf16.mxu0 %v1325_v63 }
  0x50   :  { %1312 = vmatpush3.bf16.msra.mxu1 %v1309_v51  ;;  %v593_v51 = vld [vmem:[%s2273_s7 + $0x90] sm:$0xff] }
  0x51   :  { %1346 = vmatprep.subr.bf16.mxu1 %v1345_v42  ;;  %v1351_v53 = vpack.c.bf16 %v593_v51, %v587_v50  ;;  %v620_v42 = vld [vmem:[%s2273_s7 + $0x168] sm:$0xff]  ;;  %v625_v51 = vld [vmem:[%s2273_s7 + $0x190] sm:$0xff] }
  0x52   :  { %1328 = vmatpush3.bf16.msra.mxu0 %v1325_v63  ;;  %v1357_v63 = vpack.c.bf16 %v618_v61, %v612_v60  ;;  %v1389_v44 = vpack.c.bf16 %v620_v42, %v614_v41  ;;  %v656_v60 = vld [vmem:[%s2273_s7 + $0x288] sm:$0xff]  ;;  %v1399_v61 = vpack.c.bf16 %v643_v58, %v637_v57  ;;  %v1421_v42 = vpack.c.bf16 %v622_v40, %v616_v39  ;;  %v658_v58 = vld [vmem:[%s2273_s7 + $0x298] sm:$0xff] }
  0x53   :  { %1330 = vmatprep.subr.bf16.mxu0 %v1329_v2  ;;  %v652_v57 = vld [vmem:[%s2273_s7 + $0x268] sm:$0xff] }
  0x56   :  { %1332 = vmatpush3.bf16.msra.mxu0 %v1329_v2  ;;  %v624_v2 = vld [vmem:[%s2273_s7 + $0x188] sm:$0xff] }
  0x57   :  { %1334 = vmatprep.subr.bf16.mxu0 %v1333_v5 }
  0x5a   :  { %1336 = vmatpush3.bf16.msra.mxu0 %v1333_v5  ;;  %v1361_v5 = vpack.c.bf16 %v630_v3, %v624_v2  ;;  %v660_v2 = vld [vmem:[%s2273_s7 + $0x2a8] sm:$0xff]  ;;  %v666_v3 = vld [vmem:[%s2273_s7 + $0x2d8] sm:$0xff] }
  0x5b   :  { %1338 = vmatprep.subr.bf16.mxu0 %v1337_v8  ;;  %v1373_v4 = vpack.c.bf16 %v666_v3, %v660_v2  ;;  %v663_v3 = vld [vmem:[%s2273_s7 + $0x2c0] sm:$0xff] }
  0x5e   :  { %1340 = vmatpush3.bf16.msra.mxu0 %v1337_v8  ;;  %v636_v8 = vld [vmem:[%s2273_s7 + $0x1e8] sm:$0xff] }
  0x5f   :  { %1342 = vmatprep.subr.bf16.mxu0 %v1341_v38 }
  0x62   :  { %1344 = vmatpush3.bf16.msra.mxu0 %v1341_v38 }
  0x63   :  { %1378 = vmatprep.subr.bf16.mxu0 %v1377_v47  ;;  %v626_v47 = vld [vmem:[%s2273_s7 + $0x198] sm:$0xff] }
  0x64   :  { %v1393_v50 = vpack.c.bf16 %v632_v48, %v626_v47 }
  0xf7   :  { %v997_v9 = vpop.f32.mrb[0].mxu0 }
  0xf8   :  { %v998_v11 = vpop.f32.mrb[1].mxu0 }
  0xf9   :  { %v1035_v12 = vpop.f32.mrb[0].mxu1  ;;  %v999_v13 = vadd.f32 %v998_v11, %v997_v9  ;;  %v642_v9 = vld [vmem:[%s2273_s7 + $0x218] sm:$0xff] }
  0xfa   :  { %v1036_v14 = vpop.f32.mrb[1].mxu1  ;;  %v1365_v11 = vpack.c.bf16 %v642_v9, %v636_v8  ;;  %v668_v9 = vld [vmem:[%s2273_s7 + $0x2e8] sm:$0xff] }
  0xfb   :  { %v1037_v15 = vadd.f32 %v1036_v14, %v1035_v12  ;;  %v215_v16 = vadd.f32 %v999_v13, %v962_v10  ;;  %v1000_v17 = vpop.f32.mrb[2].mxu0  ;;  %v641_v12 = vld [vmem:[%s2273_s7 + $0x210] sm:$0xff]  ;;  %v648_v14 = vld [vmem:[%s2273_s7 + $0x248] sm:$0xff] }
  0xfc   :  { %v1001_v18 = vpop.f32.mrb[3].mxu0 }
  0xfd   :  { %v1038_v19 = vpop.f32.mrb[2].mxu1  ;;  %v290_v20 = vadd.f32 %v1037_v15, %v215_v16  ;;  %v1002_v21 = vadd.f32 %v1001_v18, %v1000_v17  ;;  %v654_v15 = vld [vmem:[%s2273_s7 + $0x278] sm:$0xff]  ;;  %v647_v16 = vld [vmem:[%s2273_s7 + $0x240] sm:$0xff]  ;;  %v653_v18 = vld [vmem:[%s2273_s7 + $0x270] sm:$0xff] }
  0xfe   :  { %v1039_v22 = vpop.f32.mrb[3].mxu1  ;;  %v1369_v17 = vpack.c.bf16 %v654_v15, %v648_v14  ;;  %v580_v14 = vld [vmem:[%s2273_s7 + $0x28] sm:$0xff]  ;;  %v586_v15 = vld [vmem:[%s2273_s7 + $0x58] sm:$0xff] }
  0xff   :  { %v1040_v23 = vadd.f32 %v1039_v22, %v1038_v19  ;;  %v220_v24 = vadd.f32 %v1002_v21, %v962_v10  ;;  %v635_v10 = vld [vmem:[%s2273_s7 + $0x1e0] sm:$0xff]  ;;  %v1371_v19 = vpack.c.bf16 %v653_v18, %v647_v16  ;;  %v1409_v16 = vpack.c.bf16 %v586_v15, %v580_v14 }
 0x100   :  { %v1367_v13 = vpack.c.bf16 %v641_v12, %v635_v10  ;;  %v661_v10 = vld [vmem:[%s2273_s7 + $0x2b0] sm:$0xff]  ;;  %v667_v12 = vld [vmem:[%s2273_s7 + $0x2e0] sm:$0xff] }
 0x101   :  { %v295_v25 = vadd.f32 %v1040_v23, %v220_v24  ;;  %v577_v24 = vld [vmem:[%s2273_s7 + $0x10] sm:$0xff]  ;;  %v964_v18 = vld [vmem:[%s2272_s6] ss:$0 sm:$0xff] }
 0x117   :  { %v1073_v26 = vpop.f32.mrb[4].mxu0 }
 0x118   :  { %v1074_v27 = vpop.f32.mrb[5].mxu0 }
 0x119   :  { %v1075_v28 = vadd.f32 %v1074_v27, %v1073_v26  ;;  %v590_v27 = vld [vmem:[%s2273_s7 + $0x78] sm:$0xff] }
 0x11b   :  { %v365_v29 = vadd.f32 %v1075_v28, %v290_v20  ;;  %v1076_v30 = vpop.f32.mrb[6].mxu0  ;;  %v963_v20 = vld [vmem:[%s2270_s4] ss:$0 sm:$0xff]  ;;  %v596_v28 = vld [vmem:[%s2273_s7 + $0xa8] sm:$0xff] }
 0x11c   :  { %v1077_v31 = vpop.f32.mrb[7].mxu0 }
 0x11d   :  { %v373_v32 = vmax.f32 %v365_v29, 0.0  ;;  %v1078_v33 = vadd.f32 %v1077_v31, %v1076_v30 }
 0x11f   :  { %v370_v34 = vadd.f32 %v1078_v33, %v295_v25  ;;  %1147 = vmatprep.mubr.f32.mxu1 %v373_v32  ;;  %v583_v25 = vld [vmem:[%s2273_s7 + $0x40] sm:$0xff]  ;;  %v1381_v32 = vpack.c.bf16 %v596_v28, %v590_v27  ;;  %v589_v33 = vld [vmem:[%s2273_s7 + $0x70] sm:$0xff] }
 0x120   :  { %v1379_v30 = vpack.c.bf16 %v583_v25, %v577_v24  ;;  %v598_v24 = vld [vmem:[%s2273_s7 + $0xb8] sm:$0xff] }
 0x121   :  { %v374_v35 = vmax.f32 %v370_v34, 0.0  ;;  %v595_v34 = vld [vmem:[%s2273_s7 + $0xa0] sm:$0xff] }
 0x122   :  { %v1383_v37 = vpack.c.bf16 %v595_v34, %v589_v33  ;;  %v610_v33 = vld [vmem:[%s2273_s7 + $0x118] sm:$0xff] }
 0x123   :  { %1148 = vmatmul.mubr.f32.vlgmr.msra.gmra.mrb[4].mxu1 %v374_v35  ;;  %v602_v35 = vld [vmem:[%s2273_s7 + $0xd8] sm:$0xff] }
 0x124   :  { %1348 = vmatpush1.bf16.msra.mxu1 %v1347_v46  ;;  %v1385_v38 = vpack.c.bf16 %v608_v36, %v602_v35  ;;  %v619_v46 = vld [vmem:[%s2273_s7 + $0x160] sm:$0xff] }
 0x125   :  { %1350 = vmatprep.subr.bf16.mxu1 %v1349_v52  ;;  %v1391_v49 = vpack.c.bf16 %v619_v46, %v613_v45  ;;  %v631_v52 = vld [vmem:[%s2273_s7 + $0x1c0] sm:$0xff]  ;;  %v628_v45 = vld [vmem:[%s2273_s7 + $0x1a8] sm:$0xff]  ;;  %v634_v46 = vld [vmem:[%s2273_s7 + $0x1d8] sm:$0xff] }
 0x126   :  { %v1395_v55 = vpack.c.bf16 %v631_v52, %v625_v51  ;;  %v1425_v48 = vpack.c.bf16 %v634_v46, %v628_v45  ;;  %v640_v51 = vld [vmem:[%s2273_s7 + $0x208] sm:$0xff]  ;;  %v646_v52 = vld [vmem:[%s2273_s7 + $0x238] sm:$0xff] }
 0x128   :  { %1352 = vmatpush1.bf16.msra.mxu1 %v1351_v53  ;;  %v638_v53 = vld [vmem:[%s2273_s7 + $0x1f8] sm:$0xff] }
 0x129   :  { %1354 = vmatprep.subr.bf16.mxu1 %v1353_v56  ;;  %v1397_v56 = vpack.c.bf16 %v644_v54, %v638_v53  ;;  %v1429_v54 = vpack.c.bf16 %v646_v52, %v640_v51 }
 0x12c   :  { %1356 = vmatpush1.bf16.msra.mxu1 %v1355_v59  ;;  %v650_v59 = vld [vmem:[%s2273_s7 + $0x258] sm:$0xff] }
 0x12d   :  { %1358 = vmatprep.subr.bf16.mxu1 %v1357_v63  ;;  %v1401_v62 = vpack.c.bf16 %v656_v60, %v650_v59  ;;  %v649_v63 = vld [vmem:[%s2273_s7 + $0x250] sm:$0xff]  ;;  %v1433_v60 = vpack.c.bf16 %v658_v58, %v652_v57 }
 0x130   :  { %1360 = vmatpush1.bf16.msra.mxu1 %v1359_v1  ;;  %v1403_v1 = vpack.c.bf16 %v655_v0, %v649_v63  ;;  %v664_v63 = vld [vmem:[%s2273_s7 + $0x2c8] sm:$0xff]  ;;  %v670_v0 = vld [vmem:[%s2273_s7 + $0x2f8] sm:$0xff] }
 0x131   :  { %1362 = vmatprep.subr.bf16.mxu1 %v1361_v5  ;;  %v659_v5 = vld [vmem:[%s2273_s7 + $0x2a0] sm:$0xff]  ;;  %v1437_v2 = vpack.c.bf16 %v670_v0, %v664_v63 }
 0x132   :  { %v1375_v8 = vpack.c.bf16 %v665_v6, %v659_v5  ;;  %v673_v6 = vlaneseq }
 0x134   :  { %1364 = vmatpush1.bf16.msra.mxu1 %v1363_v7  ;;  %v662_v7 = vld [vmem:[%s2273_s7 + $0x2b8] sm:$0xff] }
 0x135   :  { %1366 = vmatprep.subr.bf16.mxu1 %v1365_v11  ;;  %v1405_v11 = vpack.c.bf16 %v668_v9, %v662_v7  ;;  %v674_v7 = vshrl.u32 %v673_v6, 7 }
 0x137   :  { %v683_v9 = vsub.s32 2, %v674_v7 }
 0x138   :  { %1368 = vmatpush1.bf16.msra.mxu1 %v1367_v13  ;;  %v1407_v13 = vpack.c.bf16 %v667_v12, %v661_v10  ;;  %v671_v10 = vld [vmem:[%s2274_s8] sm:$0x3f]  ;;  %v687_v12 = vsub.s32 3, %v674_v7 }
 0x139   :  { %1370 = vmatprep.subr.bf16.mxu1 %v1369_v17  ;;  %v1469_v17 = vmov 0.0   ;;  %v684_v14 = vrot.slane %v671_v10, %v683_v9 }
 0x13a   :  { %767 = vmatprep.mubr.f32.mxu1 %v1469_v17 }
 0x13c   :  { %1372 = vmatpush1.bf16.msra.mxu1 %v1371_v19 }
 0x13d   :  { %1374 = vmatprep.subr.bf16.mxu1 %v1373_v4  ;;  %v669_v4 = vld [vmem:[%s2273_s7 + $0x2f0] sm:$0xff] }
 0x13e   :  { %v1439_v5 = vpack.c.bf16 %v669_v4, %v663_v3 }
 0x140   :  { %1376 = vmatpush1.bf16.msra.mxu1 %v1375_v8  ;;  %v675_v8 = vsub.s32 0, %v674_v7 }
 0x141   :  { %1410 = vmatprep.subr.bf16.mxu1 %v1409_v16  ;;  %v688_v16 = vrot.slane %v671_v10, %v687_v12 }
 0x1f6   :  { %v1149_v21 = vpop.f32.mrb[4].mxu1 }
 0x1f7   :  { %v470_v22 = vadd.f32 %v1149_v21, %v963_v20  ;;  %v464_v23 = vpop.f32.mrb[5].mxu1  ;;  %v585_v21 = vld [vmem:[%s2273_s7 + $0x50] sm:$0xff] }
 0x1f8   :  { %v465_v26 = vadd.f32 %v963_v20, %v464_v23  ;;  %v579_v20 = vld [vmem:[%s2273_s7 + $0x20] sm:$0xff]  ;;  %v592_v23 = vld [vmem:[%s2273_s7 + $0x88] sm:$0xff] }
 0x1f9   :  { %v474_v31 = vmax.f32 %v470_v22, 0.0 }
 0x1fa   :  { %v473_v29 = vmax.f32 %v465_v26, 0.0  ;;  %v1411_v26 = vpack.c.bf16 %v585_v21, %v579_v20 }
 0x1fc   :  { %1182 = vmatprep.mubr.f32.mxu0 %v473_v29  ;;  %v1413_v29 = vpack.c.bf16 %v598_v24, %v592_v23 }
 0x1fd   :  { %1183 = vmatmul.mubr.f32.vlgmr.msra.gmra.mrb[8].mxu0 %v474_v31  ;;  %v597_v31 = vld [vmem:[%s2273_s7 + $0xb0] sm:$0xff] }
 0x1fe   :  { %1380 = vmatpush1.bf16.msra.mxu0 %v1379_v30  ;;  %844 = vmatprep.mubr.f32.mxu0 %v1469_v17  ;;  %v591_v30 = vld [vmem:[%s2273_s7 + $0x80] sm:$0xff] }
 0x1ff   :  { %1382 = vmatprep.subr.bf16.mxu0 %v1381_v32  ;;  %v604_v32 = vld [vmem:[%s2273_s7 + $0xe8] sm:$0xff]  ;;  %v1415_v34 = vpack.c.bf16 %v597_v31, %v591_v30 }
 0x200   :  { %v1417_v36 = vpack.c.bf16 %v610_v33, %v604_v32  ;;  %v691_v33 = vsub.s32 4, %v674_v7 }
 0x202   :  { %1384 = vmatpush1.bf16.msra.mxu0 %v1383_v37  ;;  %v603_v37 = vld [vmem:[%s2273_s7 + $0xe0] sm:$0xff] }
 0x203   :  { %1386 = vmatprep.subr.bf16.mxu0 %v1385_v38  ;;  %v609_v38 = vld [vmem:[%s2273_s7 + $0x110] sm:$0xff] }
 0x204   :  { %v1419_v41 = vpack.c.bf16 %v609_v38, %v603_v37 }
 0x206   :  { %1388 = vmatpush1.bf16.msra.mxu0 %v1387_v43  ;;  %v615_v43 = vld [vmem:[%s2273_s7 + $0x140] sm:$0xff] }
 0x207   :  { %1390 = vmatprep.subr.bf16.mxu0 %v1389_v44  ;;  %v621_v44 = vld [vmem:[%s2273_s7 + $0x170] sm:$0xff] }
 0x208   :  { %v1423_v47 = vpack.c.bf16 %v621_v44, %v615_v43 }
 0x20a   :  { %1392 = vmatpush1.bf16.msra.mxu0 %v1391_v49  ;;  %v627_v49 = vld [vmem:[%s2273_s7 + $0x1a0] sm:$0xff] }
 0x20b   :  { %1394 = vmatprep.subr.bf16.mxu0 %v1393_v50  ;;  %v633_v50 = vld [vmem:[%s2273_s7 + $0x1d0] sm:$0xff] }
 0x20c   :  { %v1427_v53 = vpack.c.bf16 %v633_v50, %v627_v49 }
 0x20e   :  { %1396 = vmatpush1.bf16.msra.mxu0 %v1395_v55  ;;  %v639_v55 = vld [vmem:[%s2273_s7 + $0x200] sm:$0xff] }
 0x20f   :  { %1398 = vmatprep.subr.bf16.mxu0 %v1397_v56  ;;  %v645_v56 = vld [vmem:[%s2273_s7 + $0x230] sm:$0xff] }
 0x210   :  { %v1431_v59 = vpack.c.bf16 %v645_v56, %v639_v55 }
 0x212   :  { %1400 = vmatpush1.bf16.msra.mxu0 %v1399_v61  ;;  %v651_v61 = vld [vmem:[%s2273_s7 + $0x260] sm:$0xff] }
 0x213   :  { %1402 = vmatprep.subr.bf16.mxu0 %v1401_v62  ;;  %v657_v62 = vld [vmem:[%s2273_s7 + $0x290] sm:$0xff]  ;;  %s1470_s7 = smov [#allocation2]  }
 0x214   :  { %s951_s8 = sshll.u32 %s1470_s7, 4  ;;  %s952_s8 = int_to_ptr.vmem [resolvable:$true] %s951_s8 }
 0x215   :  { %s1445_s16 = scalar_lea.vmem %s952_s8, 1536  ;;  %p1450_p1 = scmp.lt.s32.totalorder %s952_s8, %s952_s8 }
 0x216   :  { %1404 = vmatpush1.bf16.msra.mxu0 %v1403_v1  ;;  %v1435_v1 = vpack.c.bf16 %v657_v62, %v651_v61  ;;  %p1446_p0 = scmp.ne.s32.totalorder %s952_s8, %s1445_s16  ;;  %p1451_p2 = scmp.lt.s32.totalorder %s1445_s16, %s1445_s16 }
 0x217   :  { %1406 = vmatprep.subr.bf16.mxu0 %v1405_v11  ;;  %v679_v11 = vsub.s32 1, %v674_v7 }
 0x218   :  { %p1452_p3 = por %p1451_p2, %p1450_p1 }
 0x219   :  { %v680_v15 = vrot.slane %v671_v10, %v679_v11 }
 0x21a   :  { %1408 = vmatpush1.bf16.msra.mxu0 %v1407_v13  ;;  %v676_v13 = vrot.slane %v671_v10, %v675_v8  ;;  %p1453_p4 = pnand %p1452_p3, %p1446_p0 }
 0x2d0   :  { %v1184_v19 = vpop.f32.mrb[8].mxu0 }
 0x2d1   :  { %v564_v22 = vpop.f32.mrb[9].mxu0  ;;  %v570_v27 = vadd.f32 %v1184_v19, %v964_v18 }
 0x2d2   :  { %v565_v25 = vadd.f32 %v964_v18, %v564_v22 }
 0x2d3   :  { %v574_v35 = vmax.f32 %v570_v27, 0.0 }
 0x2d4   :  { %v2164_v28 = vmax.f32 %v565_v25, 0.0 }
 0x2d6   :  { %768 = vmatmul.mubr.f32.vlgmr.msra.gmra.mrb[6].mxu1 %v2164_v28  ;;  %845 = vmatmul.mubr.f32.vlgmr.msra.gmra.mrb[10].mxu0 %v2164_v28 }
 0x2d7   :  { %1412 = vmatpush1.bf16.msra.mxu1 %v1411_v26  ;;  %773 = vmatprep.mubr.f32.mxu1 %v1469_v17 }
 0x2d8   :  { %850 = vmatprep.mubr.f32.mxu0 %v1469_v17  ;;  %1414 = vmatprep.subr.bf16.mxu1 %v1413_v29 }
 0x2da   :  { %774 = vmatmul.mubr.f32.gmra.mrb[8].mxu1 %v574_v35  ;;  %851 = vmatmul.mubr.f32.gmra.mrb[12].mxu0 %v574_v35 }
 0x2db   :  { %1416 = vmatpush1.bf16.msra.mxu1 %v1415_v34  ;;  %921 = vmatprep.mubr.f32.mxu1 %v1469_v17  ;;  %v695_v34 = vsub.s32 5, %v674_v7 }
 0x2dc   :  { %1418 = vmatprep.subr.bf16.mxu1 %v1417_v36 }
 0x2dd   :  { %v696_v36 = vrot.slane %v671_v10, %v695_v34 }
 0x2df   :  { %1420 = vmatpush1.bf16.msra.mxu1 %v1419_v41 }
 0x2e0   :  { %1422 = vmatprep.subr.bf16.mxu1 %v1421_v42 }
 0x2e3   :  { %1424 = vmatpush1.bf16.msra.mxu1 %v1423_v47 }
 0x2e4   :  { %1426 = vmatprep.subr.bf16.mxu1 %v1425_v48 }
 0x2e7   :  { %1428 = vmatpush1.bf16.msra.mxu1 %v1427_v53 }
 0x2e8   :  { %1430 = vmatprep.subr.bf16.mxu1 %v1429_v54 }
 0x2eb   :  { %1432 = vmatpush1.bf16.msra.mxu1 %v1431_v59 }
 0x2ec   :  { %1434 = vmatprep.subr.bf16.mxu1 %v1433_v60 }
 0x2ef   :  { %1436 = vmatpush1.bf16.msra.mxu1 %v1435_v1 }
 0x2f0   :  { %1438 = vmatprep.subr.bf16.mxu1 %v1437_v2 }
 0x2f3   :  { %1440 = vmatpush1.bf16.msra.mxu1 %v1439_v5 }
 0x2f6   :  { %922 = vmatmul.mubr.f32.vlgmr.msra.gmra.mrb[10].mxu1 %v2164_v28 }
 0x2f7   :  { %927 = vmatprep.mubr.f32.mxu1 %v1469_v17 }
 0x2fa   :  { %928 = vmatmul.mubr.f32.gmra.mrb[12].mxu1 %v574_v35  ;;  %v692_v35 = vrot.slane %v671_v10, %v691_v33 }
 0x3a9   :  { %v769_v18 = vpop.f32.mrb[6].mxu1  ;;  %v846_v19 = vpop.f32.mrb[10].mxu0 }
 0x3aa   :  { %v770_v20 = vadd.f32 %v769_v18, %v676_v13  ;;  %v847_v21 = vadd.f32 %v846_v19, %v684_v14  ;;  %v771_v17 = vpop.f32.mrb[7].mxu1  ;;  %v848_v22 = vpop.f32.mrb[11].mxu0 }
 0x3ab   :  { %v772_v23 = vadd.f32 %v771_v17, %v680_v15  ;;  %v849_v24 = vadd.f32 %v848_v22, %v688_v16 }
 0x3ac   :  { %934 = vst [vmem:[#allocation2] sm:$0xff] %v770_v20  ;;  %936 = vst [vmem:[#allocation2 + $0x10] sm:$0xff] %v847_v21 }
 0x3ad   :  { %935 = vst [vmem:[#allocation2 + $0x8] sm:$0xff] %v772_v23  ;;  %937 = vst [vmem:[#allocation2 + $0x18] sm:$0xff] %v849_v24  ;;  %v775_v25 = vpop.f32.mrb[8].mxu1  ;;  %v852_v26 = vpop.f32.mrb[12].mxu0 }
 0x3ae   :  { %v776_v27 = vadd.f32 %v775_v25, %v676_v13  ;;  %v853_v28 = vadd.f32 %v852_v26, %v684_v14  ;;  %v777_v29 = vpop.f32.mrb[9].mxu1  ;;  %v854_v30 = vpop.f32.mrb[13].mxu0 }
 0x3af   :  { %v778_v31 = vadd.f32 %v777_v29, %v680_v15  ;;  %v855_v32 = vadd.f32 %v854_v30, %v688_v16 }
 0x3b0   :  { %940 = vst [vmem:[#allocation2 + $0x30] sm:$0xff] %v776_v27  ;;  %942 = vst [vmem:[#allocation2 + $0x40] sm:$0xff] %v853_v28 }
 0x3b1   :  { %941 = vst [vmem:[#allocation2 + $0x38] sm:$0xff] %v778_v31  ;;  %943 = vst [vmem:[#allocation2 + $0x48] sm:$0xff] %v855_v32 }
 0x3c9   :  { %v923_v37 = vpop.f32.mrb[10].mxu1 }
 0x3ca   :  { %v924_v38 = vadd.f32 %v923_v37, %v692_v35  ;;  %v925_v39 = vpop.f32.mrb[11].mxu1 }
 0x3cb   :  { %v926_v40 = vadd.f32 %v925_v39, %v696_v36 }
 0x3cc   :  { %938 = vst [vmem:[#allocation2 + $0x20] sm:$0xff] %v924_v38 }
 0x3cd   :  { %939 = vst [vmem:[#allocation2 + $0x28] sm:$0xff] %v926_v40  ;;  %v929_v41 = vpop.f32.mrb[12].mxu1 }
 0x3ce   :  { %v930_v42 = vadd.f32 %v929_v41, %v692_v35  ;;  %v931_v43 = vpop.f32.mrb[13].mxu1 }
 0x3cf   :  { %v932_v44 = vadd.f32 %v931_v43, %v696_v36 }
 0x3d0   :  { %944 = vst [vmem:[#allocation2 + $0x50] sm:$0xff] %v930_v42 }
 0x3d1   :  { %945 = vst [vmem:[#allocation2 + $0x58] sm:$0xff] %v932_v44 }
 0x3d2   :  { %1456 = shalt.err (!%p1453_p4)
}
 0x3d3   :  { %s1457_s18 = scalar_lea.hbm %s2275_s9, 1536 }
 0x3d4   :  { %p1458_p5 = scmp.ne.s32.totalorder %s2275_s9, %s1457_s18  ;;  %p1461_p6 = scmp.lt.u32.totalorder %s1457_s18, %s2275_s9 }
 0x3d6   :  { %p1463_p7 = pnand %p1461_p6, %p1458_p5 }
 0x3d8   :  { %1466 = shalt.err (!%p1463_p7)
}
 0x3d9   :  { %s1471_s22 = smov 768   ;;  %s1472_s23 = smov 48  }
 0x3da   :  { %957 = dma.vmem_to_hbm [thread:$0]  %s952_s8, 1536, %s2275_s9, [#allocation3], %s1471_s22, %s1471_s22, %s1472_s23  }
 0x3db   :  { %1467 = dma.done.wait [#allocation3], 1536  }
 0x3dc   :  { %1468 = vsyncadd [#allocation3], 4294965760 }
 0x3dd   :  { %961 = vsyncpa [#allocation3], 1 }

</bundles_post_ra>
